<compile_context>
chip_gen: v5e
topology: v5e:2x2
jax: 0.10.0
libtpu: 0.0.40
codegen_flags: <defaults>
</compile_context>

<pallas_src>
import math

import jax
import jax.numpy as jnp
from jax import lax
from jax.experimental import pallas as pl
from jax.experimental.pallas import tpu as pltpu

# ---------------- model dims (small, synthetic) ----------------
S = 8          # sequence length (tokenized question)
D = 32         # hidden size ("bert-base" stand-in)
F = 64         # FFN intermediate size
VOCAB = 128    # vocab size (one lane width -> lane-dense one-hot gather)
N_DOCS = 64    # real retrieval index size
N_PAD = 128    # doc axis padded to a full lane width (lane-dense scores store)
EPS = 1e-5


def _layer_norm(x, g, b):
    mean = jnp.mean(x, axis=-1, keepdims=True)
    var = jnp.mean((x - mean) ** 2, axis=-1, keepdims=True)
    return (x - mean) * lax.rsqrt(var + EPS) * g + b


# ---------------- the single fused kernel ----------------
def fused_kernel(tok_ref, embed_ref,
                 wqkv_ref, bqkv_ref, wo_ref, bo_ref, ln1g_ref, ln1b_ref,
                 w1_ref, b1_ref, w2_ref, b2_ref, ln2g_ref, ln2b_ref,
                 docsT_ref, docs_ref,
                 hid_ref, scores_ref, idx_ref, ctx_ref):
    # ---- token-embedding gather as a one-hot matmul (MXU, no dyn indexing) ----
    tid = tok_ref[...]                                       # [S, 1] int32
    vocab_iota = lax.broadcasted_iota(jnp.int32, (S, VOCAB), 1)
    onehot = (vocab_iota == tid).astype(jnp.bfloat16)        # [S, VOCAB]
    x = jnp.dot(onehot, embed_ref[...],
                preferred_element_type=jnp.float32)          # [S, D] f32

    # ---- fused QKV projection: one [S,D] x [D,3D] matmul ----
    xb = x.astype(jnp.bfloat16)
    qkv = jnp.dot(xb, wqkv_ref[...],
                  preferred_element_type=jnp.float32) + bqkv_ref[...]
    q = qkv[:, 0:D]
    k = qkv[:, D:2 * D]
    v = qkv[:, 2 * D:3 * D]

    # ---- single-head self-attention (stand-in for BERT MHA) ----
    scale = jnp.float32(1.0 / math.sqrt(D))
    # NOTE: contracting the RHS last dim implies a k transpose; negligible at
    # S=8 (would be stored pre-transposed at BERT-base scale).
    scores_att = lax.dot_general(
        q.astype(jnp.bfloat16), k.astype(jnp.bfloat16),
        (((1,), (1,)), ((), ())),
        preferred_element_type=jnp.float32) * scale          # [S, S] f32
    m = jnp.max(scores_att, axis=-1, keepdims=True)
    p = jnp.exp(scores_att - m)
    attn = p * pl.reciprocal(jnp.sum(p, axis=-1, keepdims=True), approx=True)

    ctx_att = jnp.dot(attn.astype(jnp.bfloat16), v.astype(jnp.bfloat16),
                      preferred_element_type=jnp.float32)    # [S, D]
    attn_out = jnp.dot(ctx_att.astype(jnp.bfloat16), wo_ref[...],
                       preferred_element_type=jnp.float32) + bo_ref[...]
    x1 = _layer_norm(x + attn_out, ln1g_ref[...], ln1b_ref[...])

    # ---- feed-forward ----
    h = jnp.dot(x1.astype(jnp.bfloat16), w1_ref[...],
                preferred_element_type=jnp.float32) + b1_ref[...]
    # TODO(synk): PyTorch BERT uses the exact erf GELU; the tanh approximation
    # is kept here (guaranteed Mosaic lowering) -> small, systematic drift.
    h = jax.nn.gelu(h, approximate=True)
    ffn_out = jnp.dot(h.astype(jnp.bfloat16), w2_ref[...],
                      preferred_element_type=jnp.float32) + b2_ref[...]
    x2 = _layer_norm(x1 + ffn_out, ln2g_ref[...], ln2b_ref[...])
    hid_ref[...] = x2                                        # last_hidden_state

    # ---- dense retrieval (MIPS, n_docs=1) fused in the same kernel ----
    pooled = x2[0:1, :]                                      # CLS row [1, D]
    scores = jnp.dot(pooled.astype(jnp.bfloat16), docsT_ref[...],
                     preferred_element_type=jnp.float32)     # [1, N_PAD]
    col = lax.broadcasted_iota(jnp.int32, (1, N_PAD), 1)
    scores = jnp.where(col < N_DOCS, scores, jnp.float32(-jnp.inf))
    scores_ref[...] = scores                                 # lane-dense store

    max_s = jnp.max(scores, axis=-1, keepdims=True)
    best = jnp.min(jnp.where(scores == max_s, col, N_PAD))   # first max wins
    idx_ref[0, 0] = best

    # retrieved context vector = doc_index[best]  (exact masked-sum gather)
    row = lax.broadcasted_iota(jnp.int32, (N_PAD, 1), 0)
    rowmask = (row == best).astype(jnp.float32)
    ctx_ref[...] = jnp.sum(docs_ref[...] * rowmask, axis=0, keepdims=True)


def fused_forward(tok2d, embed, wqkv, bqkv, wo, bo, ln1g, ln1b,
                  w1, b1, w2, b2, ln2g, ln2b, docsT, docs_pad):
    vmem = pl.BlockSpec(memory_space=pltpu.MemorySpace.VMEM)
    smem = pl.BlockSpec(memory_space=pltpu.MemorySpace.SMEM)
    return pl.pallas_call(
        fused_kernel,
        out_shape=(
            jax.ShapeDtypeStruct((S, D), jnp.float32),       # hidden states
            jax.ShapeDtypeStruct((1, N_PAD), jnp.float32),   # padded scores
            jax.ShapeDtypeStruct((1, 1), jnp.int32),         # best doc index
            jax.ShapeDtypeStruct((1, D), jnp.float32),       # retrieved doc vec
        ),
        in_specs=[vmem] * 16,
        out_specs=(vmem, vmem, smem, vmem),
    )(tok2d, embed, wqkv, bqkv, wo, bo, ln1g, ln1b,
      w1, b1, w2, b2, ln2g, ln2b, docsT, docs_pad)


# ---------------- glue: synthetic ContextModel forward ----------------
def init_params(key):
    ks = jax.random.split(key, 8)
    s = 0.05
    wq = jax.random.normal(ks[0], (D, D), jnp.float32) * s
    wk = jax.random.normal(ks[1], (D, D), jnp.float32) * s
    wv = jax.random.normal(ks[2], (D, D), jnp.float32) * s
    wqkv = jnp.concatenate([wq, wk, wv], axis=1).astype(jnp.bfloat16)  # [D, 3D]
    bqkv = jnp.zeros((1, 3 * D), jnp.float32)
    wo = (jax.random.normal(ks[3], (D, D), jnp.float32) * s).astype(jnp.bfloat16)
    bo = jnp.zeros((1, D), jnp.float32)
    ln1g = jnp.ones((1, D), jnp.float32)
    ln1b = jnp.zeros((1, D), jnp.float32)
    w1 = (jax.random.normal(ks[4], (D, F), jnp.float32) * s).astype(jnp.bfloat16)
    b1 = jnp.zeros((1, F), jnp.float32)
    w2 = (jax.random.normal(ks[5], (F, D), jnp.float32) * s).astype(jnp.bfloat16)
    b2 = jnp.zeros((1, D), jnp.float32)
    ln2g = jnp.ones((1, D), jnp.float32)
    ln2b = jnp.zeros((1, D), jnp.float32)
    embed = (jax.random.normal(ks[6], (VOCAB, D), jnp.float32) * 0.02
             ).astype(jnp.bfloat16)                           # 8 KiB, VMEM-resident
    doc_index = jax.random.normal(ks[7], (N_DOCS, D), jnp.float32)
    docs_pad = jnp.zeros((N_PAD, D), jnp.float32).at[:N_DOCS].set(doc_index)
    docsT = docs_pad.T.astype(jnp.bfloat16)                   # [D, N_PAD], pre-transposed
    params = (embed, wqkv, bqkv, wo, bo, ln1g, ln1b,
              w1, b1, w2, b2, ln2g, ln2b, docsT, docs_pad)
    return params, doc_index


@jax.jit
def context_model_forward(token_ids, params):
    tok2d = token_ids.reshape(S, 1).astype(jnp.int32)
    hidden, scores_pad, best_idx, ctx = fused_forward(tok2d, *params)
    pooled = hidden[0:1, :]                   # CLS pooling (stand-in)
    scores = scores_pad[:, :N_DOCS]           # drop lane padding
    context_vec = ctx[0]                      # retrieved doc embedding [D]
    # TODO(synk): tokenizer.batch_decode / ' '.join(context)[:512] are string
    # ops with no tensor semantics and are not representable as a Pallas kernel.
    return hidden, pooled, scores, best_idx, context_vec


if __name__ == "__main__":
    key = jax.random.PRNGKey(0)
    pkey, ikey = jax.random.split(key)
    params, doc_index = init_params(pkey)
    token_ids = jax.random.randint(ikey, (S,), 0, VOCAB, dtype=jnp.int32)

    outs = context_model_forward(token_ids, params)
    outs = jax.block_until_ready(outs)

    hidden, pooled, scores, best_idx, context_vec = outs
    assert hidden.shape == (S, D)
    assert pooled.shape == (1, D)
    assert scores.shape == (1, N_DOCS)
    assert best_idx.shape == (1, 1)
    assert context_vec.shape == (D,)
    b = int(best_idx[0, 0])
    assert b == int(jnp.argmax(scores[0]))
    assert bool(jnp.allclose(context_vec, doc_index[b]))
    assert bool(jnp.all(jnp.isfinite(hidden)))
    print("KERNEL_OK")
</pallas_src>

<mosaic_0001>
module attributes {stable_mosaic.version = 11 : i64} {
  func.func @fused_kernel(%arg0: memref<8x1xi32, #tpu.memory_space<vmem>>, %arg1: memref<128x32xbf16, #tpu.memory_space<vmem>>, %arg2: memref<32x96xbf16, #tpu.memory_space<vmem>>, %arg3: memref<1x96xf32, #tpu.memory_space<vmem>>, %arg4: memref<32x32xbf16, #tpu.memory_space<vmem>>, %arg5: memref<1x32xf32, #tpu.memory_space<vmem>>, %arg6: memref<1x32xf32, #tpu.memory_space<vmem>>, %arg7: memref<1x32xf32, #tpu.memory_space<vmem>>, %arg8: memref<32x64xbf16, #tpu.memory_space<vmem>>, %arg9: memref<1x64xf32, #tpu.memory_space<vmem>>, %arg10: memref<64x32xbf16, #tpu.memory_space<vmem>>, %arg11: memref<1x32xf32, #tpu.memory_space<vmem>>, %arg12: memref<1x32xf32, #tpu.memory_space<vmem>>, %arg13: memref<1x32xf32, #tpu.memory_space<vmem>>, %arg14: memref<32x128xbf16, #tpu.memory_space<vmem>>, %arg15: memref<128x32xf32, #tpu.memory_space<vmem>>, %arg16: memref<8x32xf32, #tpu.memory_space<vmem>>, %arg17: memref<1x128xf32, #tpu.memory_space<vmem>>, %arg18: memref<1x1xi32, #tpu.memory_space<smem>>, %arg19: memref<1x32xf32, #tpu.memory_space<vmem>>) attributes {dimension_semantics = [], scalar_prefetch = 0 : i64, scratch_operands = 0 : i64, tpu.core_type = #tpu.core_type<tc>} {
    %c0 = arith.constant 0 : index
    %c0_0 = arith.constant 0 : index
    %0 = vector.load %arg0[%c0, %c0_0] : memref<8x1xi32, #tpu.memory_space<vmem>>, vector<8x1xi32>
    %1 = tpu.iota {dimensions = array<i32: 1>} : vector<8x128xi32>
    %2 = vector.broadcast %0 : vector<8x1xi32> to vector<8x128xi32>
    %3 = arith.cmpi eq, %1, %2 : vector<8x128xi32>
    %4 = arith.extui %3 : vector<8x128xi1> to vector<8x128xi32>
    %5 = arith.sitofp %4 : vector<8x128xi32> to vector<8x128xf32>
    %6 = arith.truncf %5 : vector<8x128xf32> to vector<8x128xbf16>
    %c0_1 = arith.constant 0 : index
    %c0_2 = arith.constant 0 : index
    %7 = vector.load %arg1[%c0_1, %c0_2] : memref<128x32xbf16, #tpu.memory_space<vmem>>, vector<128x32xbf16>
    %cst = arith.constant dense<0.000000e+00> : vector<8x32xf32>
    %8 = tpu.matmul %6, %7, %cst {dimension_numbers = #tpu.dot_dimension_numbers<[1], [0], [0], [1], [0, 0, 1, 1], [], []>} : vector<8x128xbf16>, vector<128x32xbf16>, vector<8x32xf32> -> vector<8x32xf32>
    %9 = arith.truncf %8 : vector<8x32xf32> to vector<8x32xbf16>
    %c0_3 = arith.constant 0 : index
    %c0_4 = arith.constant 0 : index
    %10 = vector.load %arg2[%c0_3, %c0_4] : memref<32x96xbf16, #tpu.memory_space<vmem>>, vector<32x96xbf16>
    %cst_5 = arith.constant dense<0.000000e+00> : vector<8x96xf32>
    %11 = tpu.matmul %9, %10, %cst_5 {dimension_numbers = #tpu.dot_dimension_numbers<[1], [0], [0], [1], [0, 0, 1, 1], [], []>} : vector<8x32xbf16>, vector<32x96xbf16>, vector<8x96xf32> -> vector<8x96xf32>
    %c0_6 = arith.constant 0 : index
    %c0_7 = arith.constant 0 : index
    %12 = vector.load %arg3[%c0_6, %c0_7] : memref<1x96xf32, #tpu.memory_space<vmem>>, vector<1x96xf32>
    %13 = vector.broadcast %12 : vector<1x96xf32> to vector<8x96xf32>
    %14 = arith.addf %11, %13 : vector<8x96xf32>
    %15 = vector.extract_strided_slice %14 {offsets = [0, 0], sizes = [8, 32], strides = [1, 1]} : vector<8x96xf32> to vector<8x32xf32>
    %16 = vector.extract_strided_slice %14 {offsets = [0, 32], sizes = [8, 32], strides = [1, 1]} : vector<8x96xf32> to vector<8x32xf32>
    %17 = vector.extract_strided_slice %14 {offsets = [0, 64], sizes = [8, 32], strides = [1, 1]} : vector<8x96xf32> to vector<8x32xf32>
    %18 = arith.truncf %15 : vector<8x32xf32> to vector<8x32xbf16>
    %19 = arith.truncf %16 : vector<8x32xf32> to vector<8x32xbf16>
    %cst_8 = arith.constant dense<0.000000e+00> : vector<8x8xf32>
    %20 = tpu.matmul %18, %19, %cst_8 {dimension_numbers = #tpu.dot_dimension_numbers<[1], [1], [0], [0], [0, 0, 1, 0], [], []>} : vector<8x32xbf16>, vector<8x32xbf16>, vector<8x8xf32> -> vector<8x8xf32>
    %cst_9 = arith.constant 0.176776692 : f32
    %21 = vector.broadcast %cst_9 : f32 to vector<8x8xf32>
    %22 = arith.mulf %20, %21 : vector<8x8xf32>
    %cst_10 = arith.constant dense<0xFF800000> : vector<8xf32>
    %23 = vector.multi_reduction <maximumf>, %22, %cst_10 [1] : vector<8x8xf32> to vector<8xf32>
    %24 = vector.shape_cast %23 : vector<8xf32> to vector<8x1xf32>
    %25 = vector.broadcast %24 : vector<8x1xf32> to vector<8x8xf32>
    %26 = arith.subf %22, %25 : vector<8x8xf32>
    %27 = math.exp %26 : vector<8x8xf32>
    %cst_11 = arith.constant dense<0.000000e+00> : vector<8xf32>
    %28 = vector.multi_reduction <add>, %27, %cst_11 [1] : vector<8x8xf32> to vector<8xf32>
    %29 = vector.shape_cast %28 : vector<8xf32> to vector<8x1xf32>
    %30 = tpu.reciprocal %29 {approx = true} : vector<8x1xf32> -> vector<8x1xf32>
    %31 = vector.broadcast %30 : vector<8x1xf32> to vector<8x8xf32>
    %32 = arith.mulf %27, %31 : vector<8x8xf32>
    %33 = arith.truncf %32 : vector<8x8xf32> to vector<8x8xbf16>
    %34 = arith.truncf %17 : vector<8x32xf32> to vector<8x32xbf16>
    %cst_12 = arith.constant dense<0.000000e+00> : vector<8x32xf32>
    %35 = tpu.matmul %33, %34, %cst_12 {dimension_numbers = #tpu.dot_dimension_numbers<[1], [0], [0], [1], [0, 0, 1, 1], [], []>} : vector<8x8xbf16>, vector<8x32xbf16>, vector<8x32xf32> -> vector<8x32xf32>
    %36 = arith.truncf %35 : vector<8x32xf32> to vector<8x32xbf16>
    %c0_13 = arith.constant 0 : index
    %c0_14 = arith.constant 0 : index
    %37 = vector.load %arg4[%c0_13, %c0_14] : memref<32x32xbf16, #tpu.memory_space<vmem>>, vector<32x32xbf16>
    %cst_15 = arith.constant dense<0.000000e+00> : vector<8x32xf32>
    %38 = tpu.matmul %36, %37, %cst_15 {dimension_numbers = #tpu.dot_dimension_numbers<[1], [0], [0], [1], [0, 0, 1, 1], [], []>} : vector<8x32xbf16>, vector<32x32xbf16>, vector<8x32xf32> -> vector<8x32xf32>
    %c0_16 = arith.constant 0 : index
    %c0_17 = arith.constant 0 : index
    %39 = vector.load %arg5[%c0_16, %c0_17] : memref<1x32xf32, #tpu.memory_space<vmem>>, vector<1x32xf32>
    %40 = vector.broadcast %39 : vector<1x32xf32> to vector<8x32xf32>
    %41 = arith.addf %38, %40 : vector<8x32xf32>
    %42 = arith.addf %8, %41 : vector<8x32xf32>
    %c0_18 = arith.constant 0 : index
    %c0_19 = arith.constant 0 : index
    %43 = vector.load %arg6[%c0_18, %c0_19] : memref<1x32xf32, #tpu.memory_space<vmem>>, vector<1x32xf32>
    %c0_20 = arith.constant 0 : index
    %c0_21 = arith.constant 0 : index
    %44 = vector.load %arg7[%c0_20, %c0_21] : memref<1x32xf32, #tpu.memory_space<vmem>>, vector<1x32xf32>
    %cst_22 = arith.constant dense<0.000000e+00> : vector<8xf32>
    %45 = vector.multi_reduction <add>, %42, %cst_22 [1] : vector<8x32xf32> to vector<8xf32>
    %46 = vector.shape_cast %45 : vector<8xf32> to vector<8x1xf32>
    %cst_23 = arith.constant 3.200000e+01 : f32
    %47 = vector.broadcast %cst_23 : f32 to vector<8x1xf32>
    %48 = arith.divf %46, %47 : vector<8x1xf32>
    %49 = vector.broadcast %48 : vector<8x1xf32> to vector<8x32xf32>
    %50 = arith.subf %42, %49 : vector<8x32xf32>
    %51 = arith.mulf %50, %50 : vector<8x32xf32>
    %cst_24 = arith.constant dense<0.000000e+00> : vector<8xf32>
    %52 = vector.multi_reduction <add>, %51, %cst_24 [1] : vector<8x32xf32> to vector<8xf32>
    %53 = vector.shape_cast %52 : vector<8xf32> to vector<8x1xf32>
    %cst_25 = arith.constant 3.200000e+01 : f32
    %54 = vector.broadcast %cst_25 : f32 to vector<8x1xf32>
    %55 = arith.divf %53, %54 : vector<8x1xf32>
    %56 = vector.broadcast %48 : vector<8x1xf32> to vector<8x32xf32>
    %57 = arith.subf %42, %56 : vector<8x32xf32>
    %cst_26 = arith.constant 9.99999974E-6 : f32
    %58 = vector.broadcast %cst_26 : f32 to vector<8x1xf32>
    %59 = arith.addf %55, %58 : vector<8x1xf32>
    %60 = math.rsqrt %59 : vector<8x1xf32>
    %61 = vector.broadcast %60 : vector<8x1xf32> to vector<8x32xf32>
    %62 = arith.mulf %57, %61 : vector<8x32xf32>
    %63 = vector.broadcast %43 : vector<1x32xf32> to vector<8x32xf32>
    %64 = arith.mulf %62, %63 : vector<8x32xf32>
    %65 = vector.broadcast %44 : vector<1x32xf32> to vector<8x32xf32>
    %66 = arith.addf %64, %65 : vector<8x32xf32>
    %67 = arith.truncf %66 : vector<8x32xf32> to vector<8x32xbf16>
    %c0_27 = arith.constant 0 : index
    %c0_28 = arith.constant 0 : index
    %68 = vector.load %arg8[%c0_27, %c0_28] : memref<32x64xbf16, #tpu.memory_space<vmem>>, vector<32x64xbf16>
    %cst_29 = arith.constant dense<0.000000e+00> : vector<8x64xf32>
    %69 = tpu.matmul %67, %68, %cst_29 {dimension_numbers = #tpu.dot_dimension_numbers<[1], [0], [0], [1], [0, 0, 1, 1], [], []>} : vector<8x32xbf16>, vector<32x64xbf16>, vector<8x64xf32> -> vector<8x64xf32>
    %c0_30 = arith.constant 0 : index
    %c0_31 = arith.constant 0 : index
    %70 = vector.load %arg9[%c0_30, %c0_31] : memref<1x64xf32, #tpu.memory_space<vmem>>, vector<1x64xf32>
    %71 = vector.broadcast %70 : vector<1x64xf32> to vector<8x64xf32>
    %72 = arith.addf %69, %71 : vector<8x64xf32>
    %73 = arith.mulf %72, %72 : vector<8x64xf32>
    %74 = arith.mulf %72, %73 : vector<8x64xf32>
    %cst_32 = arith.constant 4.471500e-02 : f32
    %75 = vector.broadcast %cst_32 : f32 to vector<8x64xf32>
    %76 = arith.mulf %75, %74 : vector<8x64xf32>
    %77 = arith.addf %72, %76 : vector<8x64xf32>
    %cst_33 = arith.constant 0.797884583 : f32
    %78 = vector.broadcast %cst_33 : f32 to vector<8x64xf32>
    %79 = arith.mulf %78, %77 : vector<8x64xf32>
    %80 = math.tanh %79 : vector<8x64xf32>
    %cst_34 = arith.constant 1.000000e+00 : f32
    %81 = vector.broadcast %cst_34 : f32 to vector<8x64xf32>
    %82 = arith.addf %81, %80 : vector<8x64xf32>
    %cst_35 = arith.constant 5.000000e-01 : f32
    %83 = vector.broadcast %cst_35 : f32 to vector<8x64xf32>
    %84 = arith.mulf %83, %82 : vector<8x64xf32>
    %85 = arith.mulf %72, %84 : vector<8x64xf32>
    %86 = arith.truncf %85 : vector<8x64xf32> to vector<8x64xbf16>
    %c0_36 = arith.constant 0 : index
    %c0_37 = arith.constant 0 : index
    %87 = vector.load %arg10[%c0_36, %c0_37] : memref<64x32xbf16, #tpu.memory_space<vmem>>, vector<64x32xbf16>
    %cst_38 = arith.constant dense<0.000000e+00> : vector<8x32xf32>
    %88 = tpu.matmul %86, %87, %cst_38 {dimension_numbers = #tpu.dot_dimension_numbers<[1], [0], [0], [1], [0, 0, 1, 1], [], []>} : vector<8x64xbf16>, vector<64x32xbf16>, vector<8x32xf32> -> vector<8x32xf32>
    %c0_39 = arith.constant 0 : index
    %c0_40 = arith.constant 0 : index
    %89 = vector.load %arg11[%c0_39, %c0_40] : memref<1x32xf32, #tpu.memory_space<vmem>>, vector<1x32xf32>
    %90 = vector.broadcast %89 : vector<1x32xf32> to vector<8x32xf32>
    %91 = arith.addf %88, %90 : vector<8x32xf32>
    %92 = arith.addf %66, %91 : vector<8x32xf32>
    %c0_41 = arith.constant 0 : index
    %c0_42 = arith.constant 0 : index
    %93 = vector.load %arg12[%c0_41, %c0_42] : memref<1x32xf32, #tpu.memory_space<vmem>>, vector<1x32xf32>
    %c0_43 = arith.constant 0 : index
    %c0_44 = arith.constant 0 : index
    %94 = vector.load %arg13[%c0_43, %c0_44] : memref<1x32xf32, #tpu.memory_space<vmem>>, vector<1x32xf32>
    %cst_45 = arith.constant dense<0.000000e+00> : vector<8xf32>
    %95 = vector.multi_reduction <add>, %92, %cst_45 [1] : vector<8x32xf32> to vector<8xf32>
    %96 = vector.shape_cast %95 : vector<8xf32> to vector<8x1xf32>
    %cst_46 = arith.constant 3.200000e+01 : f32
    %97 = vector.broadcast %cst_46 : f32 to vector<8x1xf32>
    %98 = arith.divf %96, %97 : vector<8x1xf32>
    %99 = vector.broadcast %98 : vector<8x1xf32> to vector<8x32xf32>
    %100 = arith.subf %92, %99 : vector<8x32xf32>
    %101 = arith.mulf %100, %100 : vector<8x32xf32>
    %cst_47 = arith.constant dense<0.000000e+00> : vector<8xf32>
    %102 = vector.multi_reduction <add>, %101, %cst_47 [1] : vector<8x32xf32> to vector<8xf32>
    %103 = vector.shape_cast %102 : vector<8xf32> to vector<8x1xf32>
    %cst_48 = arith.constant 3.200000e+01 : f32
    %104 = vector.broadcast %cst_48 : f32 to vector<8x1xf32>
    %105 = arith.divf %103, %104 : vector<8x1xf32>
    %106 = vector.broadcast %98 : vector<8x1xf32> to vector<8x32xf32>
    %107 = arith.subf %92, %106 : vector<8x32xf32>
    %cst_49 = arith.constant 9.99999974E-6 : f32
    %108 = vector.broadcast %cst_49 : f32 to vector<8x1xf32>
    %109 = arith.addf %105, %108 : vector<8x1xf32>
    %110 = math.rsqrt %109 : vector<8x1xf32>
    %111 = vector.broadcast %110 : vector<8x1xf32> to vector<8x32xf32>
    %112 = arith.mulf %107, %111 : vector<8x32xf32>
    %113 = vector.broadcast %93 : vector<1x32xf32> to vector<8x32xf32>
    %114 = arith.mulf %112, %113 : vector<8x32xf32>
    %115 = vector.broadcast %94 : vector<1x32xf32> to vector<8x32xf32>
    %116 = arith.addf %114, %115 : vector<8x32xf32>
    %c0_50 = arith.constant 0 : index
    %c0_51 = arith.constant 0 : index
    %117 = vector.load %arg16[%c0_50, %c0_51] : memref<8x32xf32, #tpu.memory_space<vmem>>, vector<8x32xf32>
    tpu.vector_store %arg16[%c0_50, %c0_51], %116 {strides = array<i32>} : memref<8x32xf32, #tpu.memory_space<vmem>>, vector<8x32xf32>,
    %118 = vector.extract_strided_slice %116 {offsets = [0, 0], sizes = [1, 32], strides = [1, 1]} : vector<8x32xf32> to vector<1x32xf32>
    %119 = arith.truncf %118 : vector<1x32xf32> to vector<1x32xbf16>
    %c0_52 = arith.constant 0 : index
    %c0_53 = arith.constant 0 : index
    %120 = vector.load %arg14[%c0_52, %c0_53] : memref<32x128xbf16, #tpu.memory_space<vmem>>, vector<32x128xbf16>
    %cst_54 = arith.constant dense<0.000000e+00> : vector<1x128xf32>
    %121 = tpu.matmul %119, %120, %cst_54 {dimension_numbers = #tpu.dot_dimension_numbers<[1], [0], [0], [1], [0, 0, 1, 1], [], []>} : vector<1x32xbf16>, vector<32x128xbf16>, vector<1x128xf32> -> vector<1x128xf32>
    %122 = tpu.iota {dimensions = array<i32: 1>} : vector<1x128xi32>
    %c64_i32 = arith.constant 64 : i32
    %123 = vector.broadcast %c64_i32 : i32 to vector<1x128xi32>
    %124 = arith.cmpi slt, %122, %123 : vector<1x128xi32>
    %cst_55 = arith.constant 0xFF800000 : f32
    %125 = vector.broadcast %cst_55 : f32 to vector<1x128xf32>
    %126 = arith.select %124, %121, %125 : vector<1x128xi1>, vector<1x128xf32>
    %c0_56 = arith.constant 0 : index
    %c0_57 = arith.constant 0 : index
    %127 = vector.load %arg17[%c0_56, %c0_57] : memref<1x128xf32, #tpu.memory_space<vmem>>, vector<1x128xf32>
    tpu.vector_store %arg17[%c0_56, %c0_57], %126 {strides = array<i32>} : memref<1x128xf32, #tpu.memory_space<vmem>>, vector<1x128xf32>,
    %cst_58 = arith.constant dense<0xFF800000> : vector<1xf32>
    %128 = vector.multi_reduction <maximumf>, %126, %cst_58 [1] : vector<1x128xf32> to vector<1xf32>
    %129 = vector.shape_cast %128 : vector<1xf32> to vector<1x1xf32>
    %130 = vector.broadcast %129 : vector<1x1xf32> to vector<1x128xf32>
    %131 = arith.cmpf oeq, %126, %130 : vector<1x128xf32>
    %c128_i32 = arith.constant 128 : i32
    %132 = vector.broadcast %c128_i32 : i32 to vector<1x128xi32>
    %133 = arith.select %131, %122, %132 : vector<1x128xi1>, vector<1x128xi32>
    %134 = vector.shape_cast %133 : vector<1x128xi32> to vector<1x1x128xi32>
    %cst_59 = arith.constant dense<2147483647> : vector<1xi32>
    %135 = vector.multi_reduction <minsi>, %134, %cst_59 [1, 2] : vector<1x1x128xi32> to vector<1xi32>
    %136 = vector.shape_cast %135 : vector<1xi32> to vector<1x1x1xi32>
    %137 = vector.extract %136[0, 0, 0] : i32 from vector<1x1x1xi32>
    %c0_60 = arith.constant 0 : index
    %c0_61 = arith.constant 0 : index
    %138 = memref.load %arg18[%c0_60, %c0_61] : memref<1x1xi32, #tpu.memory_space<smem>>
    memref.store %137, %arg18[%c0_60, %c0_61] : memref<1x1xi32, #tpu.memory_space<smem>>
    %139 = tpu.iota {dimensions = array<i32: 0>} : vector<128x1xi32>
    %140 = vector.broadcast %137 : i32 to vector<128x1xi32>
    %141 = arith.cmpi eq, %139, %140 : vector<128x1xi32>
    %142 = arith.extui %141 : vector<128x1xi1> to vector<128x1xi32>
    %143 = arith.sitofp %142 : vector<128x1xi32> to vector<128x1xf32>
    %c0_62 = arith.constant 0 : index
    %c0_63 = arith.constant 0 : index
    %144 = vector.load %arg15[%c0_62, %c0_63] : memref<128x32xf32, #tpu.memory_space<vmem>>, vector<128x32xf32>
    %145 = vector.broadcast %143 : vector<128x1xf32> to vector<128x32xf32>
    %146 = arith.mulf %144, %145 : vector<128x32xf32>
    %cst_64 = arith.constant dense<0.000000e+00> : vector<32xf32>
    %147 = vector.multi_reduction <add>, %146, %cst_64 [0] : vector<128x32xf32> to vector<32xf32>
    %148 = vector.shape_cast %147 : vector<32xf32> to vector<1x32xf32>
    %c0_65 = arith.constant 0 : index
    %c0_66 = arith.constant 0 : index
    %149 = vector.load %arg19[%c0_65, %c0_66] : memref<1x32xf32, #tpu.memory_space<vmem>>, vector<1x32xf32>
    tpu.vector_store %arg19[%c0_65, %c0_66], %148 {strides = array<i32>} : memref<1x32xf32, #tpu.memory_space<vmem>>, vector<1x32xf32>,
    return
  }
}

</mosaic_0001>

<bundles_post_ra>
// kernel: context_model_forward.1
= control target key start
LH: loop header
LB: loop body
LE: loop exit
PB: predicated region body
PF: predicated region fallthrough
CT: control target
= control target key end

     0   :  { %s1288_s0 = inlined_call_operand.vmem [shape: s32[8,1], index: 0, kind: input, shape index: {}]   ;;  %s1289_s1 = inlined_call_operand.vmem [shape: bf16[128,32], index: 1, kind: input, shape index: {}]   ;;  %s1290_s2 = inlined_call_operand.vmem [shape: bf16[32,96], index: 2, kind: input, shape index: {}]   ;;  %s1291_s3 = inlined_call_operand.vmem [shape: f32[1,96], index: 3, kind: input, shape index: {}]   ;;  %s1292_s4 = inlined_call_operand.vmem [shape: bf16[32,32], index: 4, kind: input, shape index: {}]   ;;  %s1293_s5 = inlined_call_operand.vmem [shape: f32[1,32], index: 5, kind: input, shape index: {}]   ;;  %s1294_s6 = inlined_call_operand.vmem [shape: f32[1,32], index: 6, kind: input, shape index: {}]   ;;  %s1295_s7 = inlined_call_operand.vmem [shape: f32[1,32], index: 7, kind: input, shape index: {}]   ;;  %s1296_s8 = inlined_call_operand.vmem [shape: bf16[32,64], index: 8, kind: input, shape index: {}]   ;;  %s1297_s9 = inlined_call_operand.vmem [shape: f32[1,64], index: 9, kind: input, shape index: {}]   ;;  %s1298_s10 = inlined_call_operand.vmem [shape: bf16[64,32], index: 10, kind: input, shape index: {}]   ;;  %s1299_s11 = inlined_call_operand.vmem [shape: f32[1,32], index: 11, kind: input, shape index: {}]   ;;  %s1300_s12 = inlined_call_operand.vmem [shape: f32[1,32], index: 12, kind: input, shape index: {}]   ;;  %s1301_s13 = inlined_call_operand.vmem [shape: f32[1,32], index: 13, kind: input, shape index: {}]   ;;  %s1302_s14 = inlined_call_operand.vmem [shape: bf16[32,128], index: 14, kind: input, shape index: {}]   ;;  %s1303_s15 = inlined_call_operand.vmem [shape: f32[128,32], index: 15, kind: input, shape index: {}]   ;;  %s1304_s16 = inlined_call_operand.vmem [shape: f32[8,32], index: 16, kind: output, shape index: {0}]   ;;  %s1305_s17 = inlined_call_operand.hbm [shape: f32[1,128], index: 17, kind: output, shape index: {1}]   ;;  %s1306_s18 = inlined_call_operand.hbm [shape: s32[1,1], index: 18, kind: output, shape index: {2}]   ;;  %s1307_s19 = inlined_call_operand.hbm [shape: f32[1,32], index: 19, kind: output, shape index: {3}]  }
   0x1   :  { %1310 = sst [smem:[#allocation11_spill]] %s1288_s0 }
   0x2   :  { %1311 = sst [smem:[#allocation12_spill]] %s1289_s1 }
   0x3   :  { %1312 = sst [smem:[#allocation13_spill]] %s1290_s2 }
   0x4   :  { %1313 = sst [smem:[#allocation14_spill]] %s1291_s3 }
   0x5   :  { %25 = vsyncpa [#allocation3], 0 }
   0x6   :  { %26 = vsyncpa [#allocation4], 0  ;;  %s1314_s20 = sld [smem:[#allocation11_spill]]  ;;  %v937_v2 = vmov 0  }
   0x7   :  { %s1315_s22 = sld [smem:[#allocation12_spill]]  ;;  %850 = vset.pattern.permute.xlu0 %v937_v2 }
   0xc   :  { %v61_v0 = vld [vmem:[%s1314_s20] sm:$0xff] }
   0xd   :  { %v826_v1 = vld [vmem:[%s1315_s22 + $0x38] sm:$0xff]  ;;  %65 = vperm.xlu0 %850, %v61_v0   ;;  %v825_v3 = vld [vmem:[%s1315_s22 + $0x30] sm:$0xff] }
   0xe   :  { %135 = vmatpush.bf16.msra.mxu0 %v826_v1 }
   0xf   :  { %27 = vsyncpa [#allocation7], 0  ;;  %v824_v4 = vld [vmem:[%s1315_s22 + $0x28] sm:$0xff]  ;;  %v823_v5 = vld [vmem:[%s1315_s22 + $0x20] sm:$0xff]  ;;  %s1316_s24 = sld [smem:[#allocation13_spill]]  ;;  %v62_v11 = vlaneseq  ;;  %vm169_vm2 = vcmask 261120  }
  0x10   :  { %v822_v6 = vld [vmem:[%s1315_s22 + $0x18] sm:$0xff]  ;;  %v821_v7 = vld [vmem:[%s1315_s22 + $0x10] sm:$0xff]  ;;  %v820_v8 = vld [vmem:[%s1315_s22 + $0x8] sm:$0xff]  ;;  %v938_v14 = vmov 1.0|1.0   ;;  %s1317_s27 = sld [smem:[#allocation14_spill]] }
  0x11   :  { %v819_v9 = vld [vmem:[%s1315_s22] sm:$0xff]  ;;  %v1077_v12 = vand.u32 127, %v62_v11  ;;  %s939_s28 = smov 64   ;;  %s940_s29 = smov 96   ;;  %vm228_vm3 = vcmask 1043456   ;;  %vm210_vm4 = vcmask 64512  }
  0x12   :  { %136 = vmatpush.bf16.msra.mxu0 %v825_v3  ;;  %v830_v37 = vld [vmem:[%s1292_s4 + $0x8] sm:$0xff]  ;;  %v829_v38 = vld [vmem:[%s1292_s4] sm:$0xff]  ;;  %v941_v52 = vmov 32.0   ;;  %vm405_vm9 = vcmask 523264   ;;  %vm492_vm14 = vcmask 1040384   ;;  %s691_s21 = sshll.u32 %s1307_s19, 4  ;;  %s692_s21 = int_to_ptr.hbm [resolvable:$true] %s691_s21 }
  0x13   :  { %v852_v46 = vld [vmem:[%s1293_s5] ss:$0 sm:$0xff]  ;;  %v832_v0 = vld [vmem:[%s1296_s8 + $0x8] sm:$0xff]  ;;  %vm489_vm13 = vcmp.lt.s32.totalorder %v1077_v12, 64 }
  0x14   :  { %v831_v1 = vld [vmem:[%s1296_s8] sm:$0xff]  ;;  %s942_s8 = smov [#allocation2]  }
  0x15   :  { %v828_v10 = vld [vmem:[%s1316_s24 + $0x8] sm:$0xff]  ;;  %v827_v15 = vld [vmem:[%s1316_s24] sm:$0xff]  ;;  %s669_s22 = sshll.u32 %s942_s8, 4  ;;  %s670_s22 = int_to_ptr.vmem [resolvable:$true] %s669_s22 }
  0x16   :  { %137 = vmatpush.bf16.msra.mxu0 %v824_v4  ;;  %179 = vmatpush.bf16.msra.mxu1 %v828_v10  ;;  %v851_v19 = vld [vmem:[%s1317_s27] ss:$0 sm:$0xff]  ;;  %s680_s27 = sshll.u32 %s1306_s18, 4  ;;  %s681_s27 = int_to_ptr.hbm [resolvable:$true] %s680_s27 }
  0x1a   :  { %138 = vmatpush.bf16.msra.mxu0 %v823_v5  ;;  %180 = vmatpush.bf16.msra.mxu1 %v827_v15 }
  0x1e   :  { %139 = vmatpush.bf16.msra.mxu0 %v822_v6  ;;  %352 = vmatpush.bf16.msrb.mxu1 %v832_v0 }
  0x22   :  { %140 = vmatpush.bf16.msra.mxu0 %v821_v7  ;;  %353 = vmatpush.bf16.msrb.mxu1 %v831_v1 }
  0x26   :  { %141 = vmatpush.bf16.msra.mxu0 %v820_v8 }
  0x2a   :  { %142 = vmatpush.bf16.msra.mxu0 %v819_v9 }
  0x7f   :  { %v66_v13 = vpop.permute.xlu0 %65 }
  0x80   :  { %vm67_vm0 = vcmp.eq.s32.totalorder %v1077_v12, %v66_v13  ;;  %v853_v13 = vld [vmem:[%s1294_s6] ss:$0 sm:$0xff] }
  0x81   :  { %vm746_vm1 = vmpackc.low %vm67_vm0, %vm67_vm0 }
  0x82   :  { %747 = vmatmul.msk.bf16.vlgmr.msra.gmra.mxu0 %vm746_vm1, %v938_v14 }
  0xff   :  { %v144_v16 = vpop.f32.mrf.mxu0 }
 0x100   :  { %v148_v17 = vpack.c.bf16 %v144_v16, %v144_v16 }
 0x102   :  { %756 = vmatmul.msk.bf16.vlgmr.msra.gmra.mxu1 %vm169_vm2, %v148_v17 }
 0x107   :  { %v146_v18 = vpop.f32.mrf.mxu0 }
 0x17f   :  { %v182_v20 = vpop.f32.mrf.mxu1 }
 0x180   :  { %v183_v21 = vadd.f32 %v851_v19, %v182_v20  ;;  %v836_v20 = vld [vmem:[%s1298_s10 + $0x18] sm:$0xff] }
 0x182   :  { %v186_v22 = vpack.c.bf16 %v183_v21, %v183_v21  ;;  %v835_v21 = vld [vmem:[%s1298_s10 + $0x10] sm:$0xff] }
 0x184   :  { %223 = vrot.lane.b32.xlu2 %v186_v22, %s939_s28  ;;  %188 = vrot.lane.b32.xlu0 %v186_v22, %s940_s29  ;;  %s943_s29 = smov [#allocation5]  }
 0x187   :  { %v184_v23 = vpop.f32.mrf.mxu1 }
 0x188   :  { %v833_v23 = vld [vmem:[%s1298_s10] sm:$0xff] }
 0x1de   :  { %v224_v24 = vpop.permute.xlu2 %223 }
 0x1df   :  { %v230_v25 = vsel %vm228_vm3, %v224_v24, 0  ;;  %v855_v24 = vld [vmem:[%s1297_s9] ss:$0 sm:$0xff] }
 0x1e0   :  { %239 = vmatpush.bf16.msra.mxu3 %v230_v25 }
 0x1e4   :  { %275 = vmatpush.bf16.msrb.mxu3 %v830_v37 }
 0x1e8   :  { %276 = vmatpush.bf16.msrb.mxu3 %v829_v38  ;;  %v856_v38 = vld [vmem:[%s1299_s11] ss:$0 sm:$0xff] }
 0x1f6   :  { %v189_v26 = vpop.permute.xlu0 %188 }
 0x1f7   :  { %v194_v27 = vsel %vm169_vm2, %v189_v26, 0 }
 0x1f8   :  { %203 = vmatpush.bf16.xpose.msra.mxu2 %v194_v27 }
 0x1ff   :  { %757 = vmatmul.msk.bf16.vlgmr.msra.gmra.mxu2 %vm169_vm2, %v186_v22  ;;  %v834_v22 = vld [vmem:[%s1298_s10 + $0x8] sm:$0xff] }
 0x200   :  { %413 = vmatpush.bf16.msrb.mxu2 %v836_v20 }
 0x204   :  { %414 = vmatpush.bf16.msrb.mxu2 %v835_v21 }
 0x208   :  { %415 = vmatpush.bf16.msrb.mxu2 %v834_v22 }
 0x20c   :  { %416 = vmatpush.bf16.msrb.mxu2 %v833_v23 }
 0x282   :  { %v205_v28 = vpop.f32.mrf.mxu2 }
 0x283   :  { %v209_v29 = vmul.f32 0.17677669, %v205_v28 }
 0x285   :  { %v211_v30 = vsel %vm210_vm4, %v209_v29, -inf }
 0x286   :  { %212 = vmax.xlane.f32.xlu1 %v211_v30 }
 0x28a   :  { %v207_v31 = vpop.f32.mrf.mxu2 }
 0x2f9   :  { %v213_v32 = vpop.xlane.xlu1 %212 }
 0x2fa   :  { %v214_v33 = vsub.f32 %v209_v29, %v213_v32 }
 0x2fc   :  { %v215_v34 = vmul.f32 1.442695, %v214_v33 }
 0x2fe   :  { %859 = vpow2.f32 %v215_v34 }
 0x304   :  { %v860_v35 = vpop.eup %859 }
 0x305   :  { %v217_v36 = vsel %vm210_vm4, %v860_v35, 0.0 }
 0x306   :  { %218 = vadd.xlane.f32.xlu1 %v217_v36 }
 0x379   :  { %v219_v39 = vpop.xlane.xlu1 %218 }
 0x37a   :  { %861 = vrcp.f32 %v219_v39 }
 0x37b   :  { %863 = vrcp.f32 %v941_v52 }
 0x380   :  { %v862_v40 = vpop.eup %861 }
 0x381   :  { %v221_v41 = vmul.f32 %v862_v40, %v860_v35  ;;  %v864_v53 = vpop.eup %863 }
 0x382   :  { %v289_v54 = vmul.f32 32.0, %v864_v53  ;;  %vm293_vm5 = vweird.f32 %v864_v53 }
 0x383   :  { %v222_v42 = vpack.c.bf16 %v221_v41, %v221_v41 }
 0x384   :  { %v290_v55 = vsub.f32 1.0, %v289_v54 }
 0x385   :  { %758 = vmatmul.msk.bf16.vlgmr.msra.gmra.mxu3 %vm210_vm4, %v222_v42 }
 0x386   :  { %v291_v56 = vmul.f32 %v864_v53, %v290_v55 }
 0x388   :  { %v292_v57 = vadd.f32 %v864_v53, %v291_v56 }
 0x38a   :  { %v1103_v58 = vsel %vm293_vm5, %v864_v53, %v292_v57 }
 0x408   :  { %v241_v43 = vpop.f32.mrf.mxu3 }
 0x409   :  { %v245_v44 = vpack.c.bf16 %v241_v43, %v241_v43 }
 0x40b   :  { %767 = vmatmul.msk.bf16.vlgmr.msrb.gmra.mxu3 %vm169_vm2, %v245_v44 }
 0x410   :  { %v243_v45 = vpop.f32.mrf.mxu3 }
 0x48e   :  { %v278_v47 = vpop.f32.mrf.mxu3 }
 0x48f   :  { %v279_v48 = vadd.f32 %v852_v46, %v278_v47 }
 0x491   :  { %v282_v49 = vadd.f32 %v279_v48, %v144_v16  ;;  %v854_v16 = vld [vmem:[%s1295_s7] ss:$0 sm:$0xff] }
 0x493   :  { %v285_v50 = vsel %vm169_vm2, %v282_v49, 0.0 }
 0x494   :  { %286 = vadd.xlane.f32.xlu2 %v285_v50  ;;  %v837_v50 = vld [vmem:[%s1302_s14] sm:$0xff] }
 0x496   :  { %v280_v51 = vpop.f32.mrf.mxu3 }
 0x507   :  { %v287_v59 = vpop.xlane.xlu2 %286 }
 0x508   :  { %v295_v60 = vmul.f32 %v1103_v58, %v287_v59 }
 0x50a   :  { %v296_v61 = vsub.f32 %v282_v49, %v295_v60  ;;  %v838_v49 = vld [vmem:[%s1302_s14 + $0x8] sm:$0xff] }
 0x50b   :  { %482 = vmatpush.bf16.msra.mxu3 %v838_v49 }
 0x50c   :  { %v297_v62 = vmul.f32 %v296_v61, %v296_v61 }
 0x50e   :  { %v298_v63 = vsel %vm169_vm2, %v297_v62, 0.0 }
 0x50f   :  { %299 = vadd.xlane.f32.xlu0 %v298_v63  ;;  %483 = vmatpush.bf16.msra.mxu3 %v837_v50  ;;  %v595_v50 = vld [vmem:[%s1303_s15 + $0x20] sm:$0xff] }
 0x582   :  { %v300_v2 = vpop.xlane.xlu0 %299 }
 0x583   :  { %v301_v3 = vmul.f32 %v300_v2, %v1103_v58 }
 0x585   :  { %v302_v4 = vadd.f32 1e-05, %v301_v3 }
 0x587   :  { %865 = vrsqrt.f32 %v302_v4  ;;  %vm309_vm7 = vweird.f32 %v302_v4 }
 0x58d   :  { %v866_v5 = vpop.eup %865 }
 0x58e   :  { %v304_v6 = vmul.f32 %v866_v5, %v302_v4  ;;  %vm310_vm6 = vweird.f32 %v866_v5 }
 0x58f   :  { %vm311_vm8 = vmor %vm309_vm7, %vm310_vm6 }
 0x590   :  { %v305_v7 = vmul.f32 %v866_v5, %v304_v6 }
 0x592   :  { %v306_v8 = vmul.f32 0.5, %v305_v7 }
 0x594   :  { %v307_v9 = vsub.f32 1.5, %v306_v8 }
 0x596   :  { %v308_v10 = vmul.f32 %v866_v5, %v307_v9 }
 0x598   :  { %v312_v14 = vsel %vm311_vm8, %v866_v5, %v308_v10 }
 0x599   :  { %v313_v15 = vmul.f32 %v312_v14, %v296_v61  ;;  %v857_v61 = vld [vmem:[%s1300_s12] ss:$0 sm:$0xff] }
 0x59b   :  { %v317_v17 = vmul.f32 %v853_v13, %v313_v15 }
 0x59d   :  { %v321_v18 = vadd.f32 %v854_v16, %v317_v17 }
 0x59f   :  { %v322_v19 = vpack.c.bf16 %v321_v18, %v321_v18 }
 0x5a1   :  { %776 = vmatmul.msk.bf16.vlgmr.msrb.gmra.mxu1 %vm169_vm2, %v322_v19 }
 0x61e   :  { %v355_v25 = vpop.f32.mrf.mxu1 }
 0x61f   :  { %v356_v26 = vadd.f32 %v855_v24, %v355_v25 }
 0x621   :  { %v359_v27 = vmul.f32 %v356_v26, %v356_v26 }
 0x623   :  { %v360_v28 = vmul.f32 %v359_v27, %v356_v26 }
 0x625   :  { %v361_v29 = vmul.f32 0.044715, %v360_v28  ;;  %v1166_v28 = vshrl.u32 %v62_v11, 7 }
 0x626   :  { %v357_v30 = vpop.f32.mrf.mxu1 }
 0x627   :  { %v362_v31 = vadd.f32 %v361_v29, %v356_v26  ;;  %v527_v29 = vadd.s32 8, %v1166_v28  ;;  %v530_v11 = vadd.s32 32, %v1166_v28 }
 0x629   :  { %v363_v32 = vmul.f32 0.7978846, %v362_v31  ;;  %v528_v31 = vadd.s32 16, %v1166_v28 }
 0x62b   :  { %867 = vtanh.f32 %v363_v32  ;;  %v529_v32 = vadd.s32 24, %v1166_v28 }
 0x631   :  { %v868_v33 = vpop.eup %867 }
 0x632   :  { %v365_v34 = vadd.f32 1.0, %v868_v33  ;;  %v944_v33 = vmov 0.0  }
 0x634   :  { %v366_v35 = vmul.f32 0.5, %v365_v34 }
 0x636   :  { %v367_v36 = vmul.f32 %v366_v35, %v356_v26 }
 0x638   :  { %v368_v37 = vpack.c.bf16 %v367_v36, %v367_v36  ;;  %v591_v36 = vld [vmem:[%s1303_s15] sm:$0xff] }
 0x63a   :  { %793 = vmatmul.msk.bf16.vlgmr.msrb.gmra.mxu2 %vm405_vm9, %v368_v37  ;;  %v592_v37 = vld [vmem:[%s1303_s15 + $0x8] sm:$0xff] }
 0x6bd   :  { %v418_v39 = vpop.f32.mrf.mxu2 }
 0x6be   :  { %v419_v40 = vadd.f32 %v856_v38, %v418_v39  ;;  %v531_v38 = vadd.s32 40, %v1166_v28 }
 0x6c0   :  { %v422_v41 = vadd.f32 %v419_v40, %v321_v18  ;;  %v593_v40 = vld [vmem:[%s1303_s15 + $0x10] sm:$0xff] }
 0x6c2   :  { %v425_v42 = vsel %vm169_vm2, %v422_v41, 0.0 }
 0x6c3   :  { %426 = vadd.xlane.f32.xlu1 %v425_v42 }
 0x6c5   :  { %v420_v43 = vpop.f32.mrf.mxu2 }
 0x736   :  { %v427_v44 = vpop.xlane.xlu1 %426 }
 0x737   :  { %v428_v45 = vmul.f32 %v427_v44, %v1103_v58 }
 0x739   :  { %v429_v46 = vsub.f32 %v422_v41, %v428_v45  ;;  %v532_v41 = vadd.s32 48, %v1166_v28  ;;  %v594_v45 = vld [vmem:[%s1303_s15 + $0x18] sm:$0xff] }
 0x73b   :  { %v430_v47 = vmul.f32 %v429_v46, %v429_v46 }
 0x73d   :  { %v431_v48 = vsel %vm169_vm2, %v430_v47, 0.0 }
 0x73e   :  { %432 = vadd.xlane.f32.xlu1 %v431_v48  ;;  %v534_v48 = vadd.s32 64, %v1166_v28 }
 0x7b1   :  { %v433_v51 = vpop.xlane.xlu1 %432 }
 0x7b2   :  { %v434_v52 = vmul.f32 %v433_v51, %v1103_v58  ;;  %v858_v58 = vld [vmem:[%s1301_s13] ss:$0 sm:$0xff] }
 0x7b4   :  { %v435_v53 = vadd.f32 1e-05, %v434_v52 }
 0x7b6   :  { %869 = vrsqrt.f32 %v435_v53  ;;  %vm442_vm11 = vweird.f32 %v435_v53 }
 0x7bc   :  { %v870_v54 = vpop.eup %869 }
 0x7bd   :  { %v437_v55 = vmul.f32 %v870_v54, %v435_v53  ;;  %vm443_vm10 = vweird.f32 %v870_v54 }
 0x7be   :  { %vm444_vm12 = vmor %vm442_vm11, %vm443_vm10 }
 0x7bf   :  { %v438_v56 = vmul.f32 %v870_v54, %v437_v55  ;;  %v596_v55 = vld [vmem:[%s1303_s15 + $0x28] sm:$0xff] }
 0x7c1   :  { %v439_v57 = vmul.f32 0.5, %v438_v56 }
 0x7c3   :  { %v440_v59 = vsub.f32 1.5, %v439_v57  ;;  %v535_v57 = vadd.s32 72, %v1166_v28 }
 0x7c5   :  { %v441_v60 = vmul.f32 %v870_v54, %v440_v59 }
 0x7c7   :  { %v445_v62 = vsel %vm444_vm12, %v870_v54, %v441_v60 }
 0x7c8   :  { %v446_v63 = vmul.f32 %v445_v62, %v429_v46  ;;  %v533_v46 = vadd.s32 56, %v1166_v28  ;;  %v597_v62 = vld [vmem:[%s1303_s15 + $0x30] sm:$0xff] }
 0x7ca   :  { %v450_v0 = vmul.f32 %v857_v61, %v446_v63  ;;  %v536_v63 = vadd.s32 80, %v1166_v28 }
 0x7cc   :  { %v454_v1 = vadd.f32 %v858_v58, %v450_v0 }
 0x7ce   :  { %455 = vst.msk [vmem:[%s1304_s16] sm:$0xff] %vm169_vm2, %v454_v1  ;;  %v456_v2 = vpack.c.bf16 %v454_v1, %v454_v1  ;;  %s671_s16 = sshll.u32 %s1305_s17, 4  ;;  %s672_s16 = int_to_ptr.hbm [resolvable:$true] %s671_s16 }
 0x7d0   :  { %802 = vmatmul.msk.bf16.vlgmr.msra.gmra.mxu3 %vm169_vm2, %v456_v2 }
 0x853   :  { %v485_v3 = vpop.f32.mrf.mxu3 }
 0x854   :  { %v490_v4 = vsel %vm489_vm13, %v485_v3, -inf  ;;  %v598_v3 = vld [vmem:[%s1303_s15 + $0x38] sm:$0xff] }
 0x855   :  { %491 = vst [vmem:[#allocation2] sm:$0x1] %v490_v4  ;;  %v493_v5 = vsel %vm492_vm14, %v490_v4, -inf }
 0x856   :  { %494 = vmax.xlane.f32.xlu1 %v493_v5  ;;  %674 = dma.vmem_to_hbm [thread:$0]  %s670_s22, 16, %s672_s16, [#allocation3]   ;;  %v537_v5 = vadd.s32 88, %v1166_v28 }
 0x85b   :  { %v487_v6 = vpop.f32.mrf.mxu3 }
 0x8c9   :  { %v495_v7 = vpop.xlane.xlu1 %494 }
 0x8ca   :  { %vm496_vm15 = vcmp.eq.f32.partialorder %v490_v4, %v495_v7 }
 0x8cb   :  { %v497_v8 = vsel %vm496_vm15, %v1077_v12, 128 }
 0x8cc   :  { %v498_v9 = vsel %vm492_vm14, %v497_v8, 2147483647 }
 0x8cd   :  { %v500_v10 = vshra.s32 %v498_v9, 16  ;;  %v499_v14 = vand.u32 65535, %v498_v9  ;;  %v599_v9 = vld [vmem:[%s1303_s15 + $0x40] sm:$0xff] }
 0x8cf   :  { %v502_v13 = vcvt.s32.f32 %v500_v10  ;;  %v501_v16 = vcvt.s32.f32 %v499_v14 }
 0x8d1   :  { %503 = vmin.xlane.f32.xlu1 %v502_v13 }
 0x944   :  { %v504_v15 = vpop.xlane.xlu1 %503 }
 0x945   :  { %vm505_vm0 = vcmp.eq.f32.partialorder %v502_v13, %v504_v15  ;;  %v510_v12 = vcvt.f32.s32 %v504_v15  ;;  %v538_v13 = vadd.s32 96, %v1166_v28 }
 0x946   :  { %v506_v17 = vsel %vm505_vm0, %v501_v16, inf }
 0x947   :  { %507 = vmin.xlane.f32.xlu1 %v506_v17  ;;  %v511_v19 = vshll.u32 %v510_v12, 16  ;;  %v600_v17 = vld [vmem:[%s1303_s15 + $0x48] sm:$0xff] }
 0x9ba   :  { %v508_v18 = vpop.xlane.xlu1 %507 }
 0x9bb   :  { %v509_v20 = vcvt.f32.s32 %v508_v18  ;;  %v539_v18 = vadd.s32 104, %v1166_v28 }
 0x9bd   :  { %v512_v21 = vadd.s32 %v511_v19, %v509_v20 }
 0x9bf   :  { %v513_v22 = vrot.slane %v512_v21, 4 }
 0x9c1   :  { %vm514_vm1 = vcmp.lt.s32.totalorder %v512_v21, %v513_v22 }
 0x9c2   :  { %v515_v23 = vsel %vm514_vm1, %v512_v21, %v513_v22  ;;  %v601_v22 = vld [vmem:[%s1303_s15 + $0x50] sm:$0xff] }
 0x9c3   :  { %v516_v24 = vrot.slane %v515_v23, 2 }
 0x9c5   :  { %vm517_vm3 = vcmp.lt.s32.totalorder %v515_v23, %v516_v24 }
 0x9c6   :  { %v518_v25 = vsel %vm517_vm3, %v515_v23, %v516_v24  ;;  %v540_v24 = vadd.s32 112, %v1166_v28 }
 0x9c7   :  { %v519_v26 = vrot.slane %v518_v25, 1 }
 0x9c9   :  { %vm520_vm4 = vcmp.lt.s32.totalorder %v518_v25, %v519_v26 }
 0x9ca   :  { %v521_v27 = vsel %vm520_vm4, %v518_v25, %v519_v26 }
 0x9cb   :  { %839 = vpush %v521_v27 }
 0x9fc   :  { %s840_s28 = spop %839 }
 0x9fd   :  { %524 = sst [smem:[#allocation5]] %s840_s28  ;;  %v1172_v30 = vstv %s840_s28 }
 0x9fe   :  { %683 = dma.smem_to_hbm %s943_s29, 16, %s681_s27, [#allocation4]   ;;  %vm543_vm5 = vcmp.eq.s32.totalorder %v1166_v28, %v1172_v30  ;;  %vm544_vm6 = vcmp.eq.s32.totalorder %v527_v29, %v1172_v30  ;;  %vm545_vm7 = vcmp.eq.s32.totalorder %v528_v31, %v1172_v30  ;;  %vm546_vm8 = vcmp.eq.s32.totalorder %v529_v32, %v1172_v30  ;;  %v602_v29 = vld [vmem:[%s1303_s15 + $0x58] sm:$0xff] }
 0x9ff   :  { %v803_v34 = vsel %vm543_vm5, 1.0, %v944_v33  ;;  %v804_v35 = vsel %vm544_vm6, 1.0, %v944_v33  ;;  %v805_v39 = vsel %vm545_vm7, 1.0, %v944_v33  ;;  %vm547_vm9 = vcmp.eq.s32.totalorder %v530_v11, %v1172_v30 }
 0xa00   :  { %v607_v42 = vmul.f32 %v803_v34, %v591_v36  ;;  %v608_v43 = vmul.f32 %v804_v35, %v592_v37  ;;  %v806_v44 = vsel %vm546_vm8, 1.0, %v944_v33  ;;  %vm548_vm10 = vcmp.eq.s32.totalorder %v531_v38, %v1172_v30  ;;  %v603_v36 = vld [vmem:[%s1303_s15 + $0x60] sm:$0xff] }
 0xa01   :  { %v609_v47 = vmul.f32 %v805_v39, %v593_v40  ;;  %v807_v49 = vsel %vm547_vm9, 1.0, %v944_v33  ;;  %vm549_vm11 = vcmp.eq.s32.totalorder %v532_v41, %v1172_v30  ;;  %v610_v51 = vmul.f32 %v806_v44, %v594_v45  ;;  %v605_v45 = vld [vmem:[%s1303_s15 + $0x70] sm:$0xff] }
 0xa02   :  { %v623_v52 = vsel %vm169_vm2, %v607_v42, 0.0  ;;  %v624_v53 = vsel %vm169_vm2, %v608_v43, 0.0  ;;  %v808_v54 = vsel %vm548_vm10, 1.0, %v944_v33  ;;  %vm550_vm12 = vcmp.eq.s32.totalorder %v533_v46, %v1172_v30 }
 0xa03   :  { %v625_v56 = vadd.f32 %v624_v53, %v623_v52  ;;  %v611_v59 = vmul.f32 %v807_v49, %v595_v50  ;;  %v626_v60 = vsel %vm169_vm2, %v609_v47, 0.0  ;;  %v809_v61 = vsel %vm549_vm11, 1.0, %v944_v33  ;;  %v606_v50 = vld [vmem:[%s1303_s15 + $0x78] sm:$0xff] }
 0xa04   :  { %vm551_vm13 = vcmp.eq.s32.totalorder %v534_v48, %v1172_v30  ;;  %v612_v0 = vmul.f32 %v808_v54, %v596_v55  ;;  %v628_v1 = vsel %vm169_vm2, %v610_v51, 0.0  ;;  %v810_v2 = vsel %vm550_vm12, 1.0, %v944_v33 }
 0xa05   :  { %v627_v58 = vadd.f32 %v626_v60, %v625_v56  ;;  %vm552_vm14 = vcmp.eq.s32.totalorder %v535_v57, %v1172_v30  ;;  %v613_v6 = vmul.f32 %v809_v61, %v597_v62  ;;  %v630_v7 = vsel %vm169_vm2, %v611_v59, 0.0 }
 0xa06   :  { %v811_v8 = vsel %vm551_vm13, 1.0, %v944_v33  ;;  %vm553_vm15 = vcmp.eq.s32.totalorder %v536_v63, %v1172_v30  ;;  %v614_v14 = vmul.f32 %v810_v2, %v598_v3  ;;  %v632_v15 = vsel %vm169_vm2, %v612_v0, 0.0 }
 0xa07   :  { %v629_v4 = vadd.f32 %v628_v1, %v627_v58  ;;  %v812_v16 = vsel %vm552_vm14, 1.0, %v944_v33  ;;  %vm554_vm0 = vcmp.eq.s32.totalorder %v537_v5, %v1172_v30  ;;  %v615_v19 = vmul.f32 %v811_v8, %v599_v9 }
 0xa08   :  { %v634_v20 = vsel %vm169_vm2, %v613_v6, 0.0  ;;  %v813_v21 = vsel %vm553_vm15, 1.0, %v944_v33  ;;  %vm555_vm1 = vcmp.eq.s32.totalorder %v538_v13, %v1172_v30  ;;  %v616_v25 = vmul.f32 %v812_v16, %v600_v17 }
 0xa09   :  { %v631_v10 = vadd.f32 %v630_v7, %v629_v4  ;;  %v636_v26 = vsel %vm169_vm2, %v614_v14, 0.0  ;;  %v814_v27 = vsel %vm554_vm0, 1.0, %v944_v33  ;;  %v541_v32 = vadd.s32 120, %v1166_v28  ;;  %v604_v28 = vld [vmem:[%s1303_s15 + $0x68] sm:$0xff]  ;;  %s945_s15 = smov [#allocation6]  }
 0xa0a   :  { %vm556_vm3 = vcmp.eq.s32.totalorder %v539_v18, %v1172_v30  ;;  %v617_v11 = vmul.f32 %v813_v21, %v601_v22  ;;  %v638_v34 = vsel %vm169_vm2, %v615_v19, 0.0  ;;  %v815_v35 = vsel %vm555_vm1, 1.0, %v944_v33  ;;  %s689_s7 = sshll.u32 %s945_s15, 4  ;;  %s690_s7 = int_to_ptr.vmem [resolvable:$true] %s689_s7 }
 0xa0b   :  { %v633_v12 = vadd.f32 %v632_v15, %v631_v10  ;;  %vm557_vm4 = vcmp.eq.s32.totalorder %v540_v24, %v1172_v30  ;;  %v618_v38 = vmul.f32 %v814_v27, %v602_v29  ;;  %v640_v39 = vsel %vm169_vm2, %v616_v25, 0.0 }
 0xa0c   :  { %v816_v40 = vsel %vm556_vm3, 1.0, %v944_v33  ;;  %vm558_vm5 = vcmp.eq.s32.totalorder %v541_v32, %v1172_v30  ;;  %v619_v42 = vmul.f32 %v815_v35, %v603_v36  ;;  %v642_v43 = vsel %vm169_vm2, %v617_v11, 0.0 }
 0xa0d   :  { %v635_v23 = vadd.f32 %v634_v20, %v633_v12  ;;  %v817_v44 = vsel %vm557_vm4, 1.0, %v944_v33  ;;  %v620_v47 = vmul.f32 %v816_v40, %v604_v28  ;;  %v644_v48 = vsel %vm169_vm2, %v618_v38, 0.0 }
 0xa0e   :  { %v818_v49 = vsel %vm558_vm5, 1.0, %v944_v33  ;;  %v621_v51 = vmul.f32 %v817_v44, %v605_v45  ;;  %v646_v52 = vsel %vm169_vm2, %v619_v42, 0.0  ;;  %vm660_vm6 = vcmask 253952  }
 0xa0f   :  { %v637_v31 = vadd.f32 %v636_v26, %v635_v23  ;;  %v622_v54 = vmul.f32 %v818_v49, %v606_v50  ;;  %v648_v55 = vsel %vm169_vm2, %v620_v47, 0.0 }
 0xa10   :  { %v650_v57 = vsel %vm169_vm2, %v621_v51, 0.0 }
 0xa11   :  { %v639_v37 = vadd.f32 %v638_v34, %v637_v31  ;;  %v652_v60 = vsel %vm169_vm2, %v622_v54, 0.0 }
 0xa13   :  { %v641_v41 = vadd.f32 %v640_v39, %v639_v37 }
 0xa15   :  { %v643_v46 = vadd.f32 %v642_v43, %v641_v41 }
 0xa17   :  { %v645_v30 = vadd.f32 %v644_v48, %v643_v46 }
 0xa19   :  { %v647_v53 = vadd.f32 %v646_v52, %v645_v30 }
 0xa1b   :  { %v649_v56 = vadd.f32 %v648_v55, %v647_v53 }
 0xa1d   :  { %v651_v59 = vadd.f32 %v650_v57, %v649_v56 }
 0xa1f   :  { %v653_v61 = vadd.f32 %v652_v60, %v651_v59 }
 0xa21   :  { %v654_v33 = vrot.slane %v653_v61, 4 }
 0xa23   :  { %v655_v62 = vadd.f32 %v654_v33, %v653_v61 }
 0xa25   :  { %v656_v58 = vrot.slane %v655_v62, 2 }
 0xa27   :  { %v657_v63 = vadd.f32 %v656_v58, %v655_v62 }
 0xa29   :  { %v658_v0 = vrot.slane %v657_v63, 1 }
 0xa2b   :  { %v659_v1 = vadd.f32 %v658_v0, %v657_v63 }
 0xa2d   :  { %661 = vst.msk [vmem:[#allocation6] sm:$0x1] %vm660_vm6, %v659_v1 }
 0xa2e   :  { %694 = dma.vmem_to_hbm [thread:$0]  %s690_s7, 16, %s692_s21, [#allocation7]  }
 0xa2f   :  { %931 = dma.done.wait [#allocation3], 16  }
 0xa30   :  { %932 = vsyncadd [#allocation3], 4294967280 }
 0xa31   :  { %933 = dma.done.wait [#allocation4], 16  }
 0xa32   :  { %934 = vsyncadd [#allocation4], 4294967280 }
 0xa33   :  { %935 = dma.done.wait [#allocation7], 16  }
 0xa34   :  { %936 = vsyncadd [#allocation7], 4294967280 }
 0xa35   :  { %709 = sfence }
 0xa36   :  { %710 = vsyncpa [#allocation3], 1 }
 0xa37   :  { %711 = vsyncpa [#allocation7], 1 }
 0xa38   :  { %712 = vsyncpa [#allocation4], 1 }

</bundles_post_ra>
